<compile_context>
chip_gen: v6e
topology: v6e:2x2x1
jax: 0.10.0
libtpu: 0.0.40
codegen_flags: <defaults>
</compile_context>

<pallas_src>
import math

import jax
import jax.numpy as jnp
from jax.experimental import pallas as pl
from jax.experimental.pallas import tpu as pltpu

# ---- small synthetic BERT config (real GTE-base: H=768, NH=12, FF=3072, L=12, S<=512) ----
B, S, H = 2, 8, 32          # batch, seq, hidden
NH, HD = 2, 16              # heads, head dim (NH * HD == H)
FF = 64                     # FFN intermediate size
L = 2                       # encoder layers
VOCAB = 64
TYPE_VOCAB = 2
MAX_POS = 16
LN_EPS = 1e-12


def _layernorm(x, gamma, beta):
    mu = jnp.mean(x, axis=-1, keepdims=True)
    var = jnp.mean((x - mu) ** 2, axis=-1, keepdims=True)
    return (x - mu) * jax.lax.rsqrt(var + LN_EPS) * gamma + beta


# -------------------- fused encoder-stack kernel --------------------
#
# grid = (B, L): outer batch axis is "parallel" (megacore-shardable), inner layer axis is
# "arbitrary". The activation for the current batch row stays resident in VMEM scratch across
# all layer steps; the pooled sentence embedding is produced as an epilogue of the last layer.

def encoder_stack_kernel(emb_ref, mask_ref, embln_ref,
                         wqkv_ref, wo_ref, wi_ref, wo2_ref,
                         bqkv_ref, bi_ref, vecs_ref,
                         out_ref,
                         act_ref, ctx_ref, bias_ref):
    l = pl.program_id(1)
    n_layers = pl.num_programs(1)

    # ---- layer 0: embedding LayerNorm into the resident activation + hoisted mask bias ----
    @pl.when(l == 0)
    def _init():
        emb = emb_ref[0].astype(jnp.float32)                      # (S, H)
        gamma = embln_ref[0:1, :]
        beta = embln_ref[1:2, :]
        act_ref[...] = _layernorm(emb, gamma, beta)
        # additive attention-mask bias over the key axis, computed once per batch row
        bias_ref[...] = (1.0 - mask_ref[0]) * -1e9                # (1, S)

    x = act_ref[...]                                              # (S, H) f32  (= hidden state l)
    x_bf = x.astype(jnp.bfloat16)

    # ---- fused QKV projection: one MXU pass over a 3H-wide N dimension ----
    qkv = jnp.dot(x_bf, wqkv_ref[0],
                  preferred_element_type=jnp.float32) + bqkv_ref[0]   # (S, 3H) f32

    # ---- batched multi-head attention (no per-head matmul loop, no output concat) ----
    qh = jnp.stack([qkv[:, h * HD:(h + 1) * HD] for h in range(NH)], axis=0)              # (NH,S,HD)
    kh = jnp.stack([qkv[:, H + h * HD:H + (h + 1) * HD] for h in range(NH)], axis=0)      # (NH,S,HD)
    vh = jnp.stack([qkv[:, 2 * H + h * HD:2 * H + (h + 1) * HD] for h in range(NH)], axis=0)

    scale = 1.0 / math.sqrt(HD)
    bias = bias_ref[...][None, :, :]                              # (1, 1, S) -> broadcast over keys
    sc = jnp.einsum('hqd,hkd->hqk',
                    qh.astype(jnp.bfloat16), kh.astype(jnp.bfloat16),
                    preferred_element_type=jnp.float32) * scale + bias   # (NH, S, S)
    sc = sc - jnp.max(sc, axis=-1, keepdims=True)
    p = jnp.exp(sc)
    p = p * pl.reciprocal(jnp.sum(p, axis=-1, keepdims=True), approx=True)
    ctx = jnp.einsum('hqk,hkd->hqd',
                     p.astype(jnp.bfloat16), vh.astype(jnp.bfloat16),
                     preferred_element_type=jnp.float32)          # (NH, S, HD)
    for h in range(NH):                                           # lane-slice stores into (S, H)
        ctx_ref[:, h * HD:(h + 1) * HD] = ctx[h]

    vec = vecs_ref[0]                                             # (6, H): bo, g1, b1, bo2, g2, b2
    attn = jnp.dot(ctx_ref[...].astype(jnp.bfloat16), wo_ref[0],
                   preferred_element_type=jnp.float32) + vec[0:1, :]
    h1 = _layernorm(x + attn, vec[1:2, :], vec[2:3, :])

    # ---- feed-forward ----
    ff = jnp.dot(h1.astype(jnp.bfloat16), wi_ref[0],
                 preferred_element_type=jnp.float32) + bi_ref[0]
    # TODO(synk): HF BERT/GTE use exact erf-based GELU; tanh approximation is used here.
    ff = jax.nn.gelu(ff, approximate=True)
    ff = jnp.dot(ff.astype(jnp.bfloat16), wo2_ref[0],
                 preferred_element_type=jnp.float32) + vec[3:4, :]
    h2 = _layernorm(h1 + ff, vec[4:5, :], vec[5:6, :])

    act_ref[...] = h2                                             # hidden state l+1, stays resident

    # ---- pooling epilogue: mean over seq of (h_{L-1} + h_L)/2, plain mean over dim=1
    #      exactly as in the PyTorch reference (no mask weighting). ----
    @pl.when(l == n_layers - 1)
    def _pool():
        avg = (x + h2) * 0.5
        out_ref[0] = jnp.mean(avg, axis=0, keepdims=True)         # (1, H)


def run_gte_stack(emb, mask3, params):
    def _stacked_spec(arr):
        # one layer's slice per grid step along the layer axis
        return pl.BlockSpec((1,) + arr.shape[1:], lambda b, l: (l, 0, 0))

    in_specs = [
        pl.BlockSpec((1, S, H), lambda b, l: (b, 0, 0)),   # embeddings (pre-LN)
        pl.BlockSpec((1, 1, S), lambda b, l: (b, 0, 0)),   # attention mask
        pl.BlockSpec((2, H), lambda b, l: (0, 0)),         # embedding LN gamma/beta slab
        _stacked_spec(params["wqkv"]),
        _stacked_spec(params["wo"]),
        _stacked_spec(params["wi"]),
        _stacked_spec(params["wo2"]),
        _stacked_spec(params["bqkv"]),
        _stacked_spec(params["bi"]),
        _stacked_spec(params["vecs"]),
    ]

    out = pl.pallas_call(
        encoder_stack_kernel,
        out_shape=jax.ShapeDtypeStruct((B, 1, H), jnp.float32),
        grid=(B, L),
        in_specs=in_specs,
        out_specs=pl.BlockSpec((1, 1, H), lambda b, l: (b, 0, 0)),
        scratch_shapes=[
            pltpu.VMEM((S, H), jnp.float32),   # resident activation
            pltpu.VMEM((S, H), jnp.float32),   # attention context (lane-dense, avoids concat)
            pltpu.VMEM((1, S), jnp.float32),   # hoisted additive attention-mask bias
        ],
        compiler_params=pltpu.CompilerParams(
            dimension_semantics=("parallel", "arbitrary"),
            # at real GTE-base sizes raise this further (v6e) / keep bf16 + FFN tiling (v7x)
            vmem_limit_bytes=48 * 1024 * 1024,
        ),
    )(emb, mask3, params["emb_ln"], params["wqkv"], params["wo"], params["wi"],
      params["wo2"], params["bqkv"], params["bi"], params["vecs"])
    return out[:, 0, :]


# -------------------- parameter construction (deterministic, synthetic) --------------------

def make_params(key):
    def normal(k, shape, std=0.02):
        return (std * jax.random.normal(k, shape)).astype(jnp.float32)

    keys = jax.random.split(key, 4 + L)
    word_emb = normal(keys[0], (VOCAB, H))
    pos_emb = normal(keys[1], (MAX_POS, H))
    type_emb = normal(keys[2], (TYPE_VOCAB, H))
    emb_ln = jnp.concatenate([jnp.ones((1, H), jnp.float32),
                              jnp.zeros((1, H), jnp.float32)], axis=0)   # (2, H)

    wqkv, wo, wi, wo2, bqkv, bi, vecs = [], [], [], [], [], [], []
    for layer_idx in range(L):
        lk = jax.random.split(keys[4 + layer_idx], 6)
        wq = normal(lk[0], (H, H))
        wk = normal(lk[1], (H, H))
        wv = normal(lk[2], (H, H))
        wqkv.append(jnp.concatenate([wq, wk, wv], axis=1))               # (H, 3H)
        wo.append(normal(lk[3], (H, H)))
        wi.append(normal(lk[4], (H, FF)))
        wo2.append(normal(lk[5], (FF, H)))
        bqkv.append(jnp.zeros((1, 3 * H), jnp.float32))
        bi.append(jnp.zeros((1, FF), jnp.float32))
        # packed slab rows: bo, ln1_gamma, ln1_beta, bo2, ln2_gamma, ln2_beta
        vecs.append(jnp.stack([jnp.zeros(H), jnp.ones(H), jnp.zeros(H),
                               jnp.zeros(H), jnp.ones(H), jnp.zeros(H)]).astype(jnp.float32))

    return {
        "word_emb": word_emb, "pos_emb": pos_emb, "type_emb": type_emb,
        "emb_ln": emb_ln,
        # matmul weights stacked over layers, stored in bf16 (2x MXU rate, half the DMA bytes)
        "wqkv": jnp.stack(wqkv).astype(jnp.bfloat16),   # (L, H, 3H)
        "wo":   jnp.stack(wo).astype(jnp.bfloat16),     # (L, H, H)
        "wi":   jnp.stack(wi).astype(jnp.bfloat16),     # (L, H, FF)
        "wo2":  jnp.stack(wo2).astype(jnp.bfloat16),    # (L, FF, H)
        # small per-layer params packed into a few slabs (fewer inputs / DMA descriptors)
        "bqkv": jnp.stack(bqkv),                        # (L, 1, 3H) f32
        "bi":   jnp.stack(bi),                          # (L, 1, FF) f32
        "vecs": jnp.stack(vecs),                        # (L, 6, H)  f32
    }


def gte_forward(params, input_ids, attention_mask, token_type_ids):
    # embedding gathers in plain JAX (word + position + token-type), LN happens in-kernel
    pos_ids = jnp.arange(S)
    emb = (jnp.take(params["word_emb"], input_ids, axis=0)
           + jnp.take(params["pos_emb"], pos_ids, axis=0)[None, :, :]
           + jnp.take(params["type_emb"], token_type_ids, axis=0)).astype(jnp.float32)
    mask3 = attention_mask.astype(jnp.float32).reshape(B, 1, S)
    # returns mean over seq of the average of the last two hidden states (the PyTorch forward)
    return run_gte_stack(emb, mask3, params)


if __name__ == "__main__":
    key = jax.random.PRNGKey(0)
    pkey, ikey = jax.random.split(key)
    params = make_params(pkey)

    input_ids = jax.random.randint(ikey, (B, S), 0, VOCAB, dtype=jnp.int32)
    attention_mask = jnp.ones((B, S), jnp.int32).at[1, 6:].set(0)
    token_type_ids = jnp.zeros((B, S), jnp.int32)

    fwd = jax.jit(gte_forward)
    sentence_embedding = fwd(params, input_ids, attention_mask, token_type_ids)
    sentence_embedding = jax.block_until_ready(sentence_embedding)
    assert sentence_embedding.shape == (B, H)
    print("KERNEL_OK")
</pallas_src>

<mosaic_0001>
module attributes {stable_mosaic.version = 11 : i64} {
  func.func @encoder_stack_kernel(%arg0: i32, %arg1: i32, %arg2: memref<1x8x32xf32, #tpu.memory_space<vmem>>, %arg3: memref<1x1x8xf32, #tpu.memory_space<vmem>>, %arg4: memref<2x32xf32, #tpu.memory_space<vmem>>, %arg5: memref<1x32x96xbf16, #tpu.memory_space<vmem>>, %arg6: memref<1x32x32xbf16, #tpu.memory_space<vmem>>, %arg7: memref<1x32x64xbf16, #tpu.memory_space<vmem>>, %arg8: memref<1x64x32xbf16, #tpu.memory_space<vmem>>, %arg9: memref<1x1x96xf32, #tpu.memory_space<vmem>>, %arg10: memref<1x1x64xf32, #tpu.memory_space<vmem>>, %arg11: memref<1x6x32xf32, #tpu.memory_space<vmem>>, %arg12: memref<1x1x32xf32, #tpu.memory_space<vmem>>, %arg13: memref<8x32xf32, #tpu.memory_space<vmem>>, %arg14: memref<8x32xf32, #tpu.memory_space<vmem>>, %arg15: memref<1x8xf32, #tpu.memory_space<vmem>>) attributes {dimension_semantics = [#tpu.dimension_semantics<parallel>, #tpu.dimension_semantics<arbitrary>], iteration_bounds = array<i64: 2, 2>, scalar_prefetch = 0 : i64, scratch_operands = 3 : i64, tpu.core_type = #tpu.core_type<tc>, window_params = [{transform_indices = @transform_0, window_bounds = array<i64: 1, 8, 32>}, {transform_indices = @transform_1, window_bounds = array<i64: 1, 1, 8>}, {pipeline_mode = #tpu.pipeline_mode<synchronous>, transform_indices = @transform_2, window_bounds = array<i64: 2, 32>}, {transform_indices = @transform_3, window_bounds = array<i64: 1, 32, 96>}, {transform_indices = @transform_4, window_bounds = array<i64: 1, 32, 32>}, {transform_indices = @transform_5, window_bounds = array<i64: 1, 32, 64>}, {transform_indices = @transform_6, window_bounds = array<i64: 1, 64, 32>}, {transform_indices = @transform_7, window_bounds = array<i64: 1, 1, 96>}, {transform_indices = @transform_8, window_bounds = array<i64: 1, 1, 64>}, {transform_indices = @transform_9, window_bounds = array<i64: 1, 6, 32>}, {transform_indices = @transform_10, window_bounds = array<i64: 1, 1, 32>}]} {
    %c0_i32 = arith.constant 0 : i32
    %0 = arith.cmpi eq, %arg1, %c0_i32 : i32
    %1 = arith.extui %0 : i1 to i32
    %c0_i32_0 = arith.constant 0 : i32
    %2 = arith.cmpi ne, %1, %c0_i32_0 : i32
    scf.if %2 {
      %c0_55 = arith.constant 0 : index
      %c0_56 = arith.constant 0 : index
      %c0_57 = arith.constant 0 : index
      %147 = vector.load %arg2[%c0_55, %c0_56, %c0_57] : memref<1x8x32xf32, #tpu.memory_space<vmem>>, vector<1x8x32xf32>
      %148 = vector.shape_cast %147 : vector<1x8x32xf32> to vector<8x32xf32>
      %c0_58 = arith.constant 0 : index
      %c0_59 = arith.constant 0 : index
      %149 = vector.load %arg4[%c0_58, %c0_59] : memref<2x32xf32, #tpu.memory_space<vmem>>, vector<1x32xf32>
      %c1 = arith.constant 1 : index
      %c0_60 = arith.constant 0 : index
      %150 = vector.load %arg4[%c1, %c0_60] : memref<2x32xf32, #tpu.memory_space<vmem>>, vector<1x32xf32>
      %cst_61 = arith.constant dense<0.000000e+00> : vector<8xf32>
      %151 = vector.multi_reduction <add>, %148, %cst_61 [1] : vector<8x32xf32> to vector<8xf32>
      %152 = vector.shape_cast %151 : vector<8xf32> to vector<8x1xf32>
      %cst_62 = arith.constant 3.200000e+01 : f32
      %153 = vector.broadcast %cst_62 : f32 to vector<8x1xf32>
      %154 = arith.divf %152, %153 : vector<8x1xf32>
      %155 = vector.broadcast %154 : vector<8x1xf32> to vector<8x32xf32>
      %156 = arith.subf %148, %155 : vector<8x32xf32>
      %157 = arith.mulf %156, %156 : vector<8x32xf32>
      %cst_63 = arith.constant dense<0.000000e+00> : vector<8xf32>
      %158 = vector.multi_reduction <add>, %157, %cst_63 [1] : vector<8x32xf32> to vector<8xf32>
      %159 = vector.shape_cast %158 : vector<8xf32> to vector<8x1xf32>
      %cst_64 = arith.constant 3.200000e+01 : f32
      %160 = vector.broadcast %cst_64 : f32 to vector<8x1xf32>
      %161 = arith.divf %159, %160 : vector<8x1xf32>
      %162 = vector.broadcast %154 : vector<8x1xf32> to vector<8x32xf32>
      %163 = arith.subf %148, %162 : vector<8x32xf32>
      %cst_65 = arith.constant 9.99999996E-13 : f32
      %164 = vector.broadcast %cst_65 : f32 to vector<8x1xf32>
      %165 = arith.addf %161, %164 : vector<8x1xf32>
      %166 = math.rsqrt %165 : vector<8x1xf32>
      %167 = vector.broadcast %166 : vector<8x1xf32> to vector<8x32xf32>
      %168 = arith.mulf %163, %167 : vector<8x32xf32>
      %169 = vector.broadcast %149 : vector<1x32xf32> to vector<8x32xf32>
      %170 = arith.mulf %168, %169 : vector<8x32xf32>
      %171 = vector.broadcast %150 : vector<1x32xf32> to vector<8x32xf32>
      %172 = arith.addf %170, %171 : vector<8x32xf32>
      %c0_66 = arith.constant 0 : index
      %c0_67 = arith.constant 0 : index
      %173 = vector.load %arg13[%c0_66, %c0_67] : memref<8x32xf32, #tpu.memory_space<vmem>>, vector<8x32xf32>
      tpu.vector_store %arg13[%c0_66, %c0_67], %172 {strides = array<i32>} : memref<8x32xf32, #tpu.memory_space<vmem>>, vector<8x32xf32>,
      %c0_68 = arith.constant 0 : index
      %c0_69 = arith.constant 0 : index
      %c0_70 = arith.constant 0 : index
      %174 = vector.load %arg3[%c0_68, %c0_69, %c0_70] : memref<1x1x8xf32, #tpu.memory_space<vmem>>, vector<1x1x8xf32>
      %175 = vector.shape_cast %174 : vector<1x1x8xf32> to vector<1x8xf32>
      %cst_71 = arith.constant 1.000000e+00 : f32
      %176 = vector.broadcast %cst_71 : f32 to vector<1x8xf32>
      %177 = arith.subf %176, %175 : vector<1x8xf32>
      %cst_72 = arith.constant -1.000000e+09 : f32
      %178 = vector.broadcast %cst_72 : f32 to vector<1x8xf32>
      %179 = arith.mulf %177, %178 : vector<1x8xf32>
      %c0_73 = arith.constant 0 : index
      %c0_74 = arith.constant 0 : index
      %180 = vector.load %arg15[%c0_73, %c0_74] : memref<1x8xf32, #tpu.memory_space<vmem>>, vector<1x8xf32>
      tpu.vector_store %arg15[%c0_73, %c0_74], %179 {strides = array<i32>} : memref<1x8xf32, #tpu.memory_space<vmem>>, vector<1x8xf32>,
    } else {
    }
    %c0 = arith.constant 0 : index
    %c0_1 = arith.constant 0 : index
    %3 = vector.load %arg13[%c0, %c0_1] : memref<8x32xf32, #tpu.memory_space<vmem>>, vector<8x32xf32>
    %4 = arith.truncf %3 : vector<8x32xf32> to vector<8x32xbf16>
    %c0_2 = arith.constant 0 : index
    %c0_3 = arith.constant 0 : index
    %c0_4 = arith.constant 0 : index
    %5 = vector.load %arg5[%c0_2, %c0_3, %c0_4] : memref<1x32x96xbf16, #tpu.memory_space<vmem>>, vector<1x32x96xbf16>
    %6 = vector.shape_cast %5 : vector<1x32x96xbf16> to vector<32x96xbf16>
    %cst = arith.constant dense<0.000000e+00> : vector<8x96xf32>
    %7 = tpu.matmul %4, %6, %cst {dimension_numbers = #tpu.dot_dimension_numbers<[1], [0], [0], [1], [0, 0, 1, 1], [], []>} : vector<8x32xbf16>, vector<32x96xbf16>, vector<8x96xf32> -> vector<8x96xf32>
    %c0_5 = arith.constant 0 : index
    %c0_6 = arith.constant 0 : index
    %c0_7 = arith.constant 0 : index
    %8 = vector.load %arg9[%c0_5, %c0_6, %c0_7] : memref<1x1x96xf32, #tpu.memory_space<vmem>>, vector<1x1x96xf32>
    %9 = vector.shape_cast %8 : vector<1x1x96xf32> to vector<1x96xf32>
    %10 = vector.broadcast %9 : vector<1x96xf32> to vector<8x96xf32>
    %11 = arith.addf %7, %10 : vector<8x96xf32>
    %12 = vector.extract_strided_slice %11 {offsets = [0, 0], sizes = [8, 16], strides = [1, 1]} : vector<8x96xf32> to vector<8x16xf32>
    %13 = vector.extract_strided_slice %11 {offsets = [0, 16], sizes = [8, 16], strides = [1, 1]} : vector<8x96xf32> to vector<8x16xf32>
    %14 = vector.shape_cast %12 : vector<8x16xf32> to vector<1x8x16xf32>
    %15 = vector.shape_cast %13 : vector<8x16xf32> to vector<1x8x16xf32>
    %16 = tpu.concatenate %14, %15 in 0 : vector<1x8x16xf32>, vector<1x8x16xf32> -> vector<2x8x16xf32>
    %17 = vector.extract_strided_slice %11 {offsets = [0, 32], sizes = [8, 16], strides = [1, 1]} : vector<8x96xf32> to vector<8x16xf32>
    %18 = vector.extract_strided_slice %11 {offsets = [0, 48], sizes = [8, 16], strides = [1, 1]} : vector<8x96xf32> to vector<8x16xf32>
    %19 = vector.shape_cast %17 : vector<8x16xf32> to vector<1x8x16xf32>
    %20 = vector.shape_cast %18 : vector<8x16xf32> to vector<1x8x16xf32>
    %21 = tpu.concatenate %19, %20 in 0 : vector<1x8x16xf32>, vector<1x8x16xf32> -> vector<2x8x16xf32>
    %22 = vector.extract_strided_slice %11 {offsets = [0, 64], sizes = [8, 16], strides = [1, 1]} : vector<8x96xf32> to vector<8x16xf32>
    %23 = vector.extract_strided_slice %11 {offsets = [0, 80], sizes = [8, 16], strides = [1, 1]} : vector<8x96xf32> to vector<8x16xf32>
    %24 = vector.shape_cast %22 : vector<8x16xf32> to vector<1x8x16xf32>
    %25 = vector.shape_cast %23 : vector<8x16xf32> to vector<1x8x16xf32>
    %26 = tpu.concatenate %24, %25 in 0 : vector<1x8x16xf32>, vector<1x8x16xf32> -> vector<2x8x16xf32>
    %c0_8 = arith.constant 0 : index
    %c0_9 = arith.constant 0 : index
    %27 = vector.load %arg15[%c0_8, %c0_9] : memref<1x8xf32, #tpu.memory_space<vmem>>, vector<1x8xf32>
    %28 = vector.shape_cast %27 : vector<1x8xf32> to vector<1x1x8xf32>
    %29 = arith.truncf %16 : vector<2x8x16xf32> to vector<2x8x16xbf16>
    %30 = arith.truncf %21 : vector<2x8x16xf32> to vector<2x8x16xbf16>
    "tpu.trace_start"() <{level = 10 : i32, message = "hqd,hkd->hqk"}> : () -> ()
    %cst_10 = arith.constant dense<0.000000e+00> : vector<2x8x8xf32>
    %31 = tpu.matmul %29, %30, %cst_10 {dimension_numbers = #tpu.dot_dimension_numbers<[2], [2], [1], [1], [0, 0, 0, 1, 1, 1], [0], [0]>} : vector<2x8x16xbf16>, vector<2x8x16xbf16>, vector<2x8x8xf32> -> vector<2x8x8xf32>
    "tpu.trace_stop"() : () -> ()
    %cst_11 = arith.constant 2.500000e-01 : f32
    %32 = vector.broadcast %cst_11 : f32 to vector<2x8x8xf32>
    %33 = arith.mulf %31, %32 : vector<2x8x8xf32>
    %34 = vector.broadcast %28 : vector<1x1x8xf32> to vector<2x8x8xf32>
    %35 = arith.addf %33, %34 : vector<2x8x8xf32>
    %cst_12 = arith.constant dense<0xFF800000> : vector<2x8xf32>
    %36 = vector.multi_reduction <maximumf>, %35, %cst_12 [2] : vector<2x8x8xf32> to vector<2x8xf32>
    %37 = vector.shape_cast %36 : vector<2x8xf32> to vector<2x8x1xf32>
    %38 = vector.broadcast %37 : vector<2x8x1xf32> to vector<2x8x8xf32>
    %39 = arith.subf %35, %38 : vector<2x8x8xf32>
    %40 = math.exp %39 : vector<2x8x8xf32>
    %cst_13 = arith.constant dense<0.000000e+00> : vector<2x8xf32>
    %41 = vector.multi_reduction <add>, %40, %cst_13 [2] : vector<2x8x8xf32> to vector<2x8xf32>
    %42 = vector.shape_cast %41 : vector<2x8xf32> to vector<2x8x1xf32>
    %43 = tpu.reciprocal %42 {approx = true} : vector<2x8x1xf32> -> vector<2x8x1xf32>
    %44 = vector.broadcast %43 : vector<2x8x1xf32> to vector<2x8x8xf32>
    %45 = arith.mulf %40, %44 : vector<2x8x8xf32>
    %46 = arith.truncf %45 : vector<2x8x8xf32> to vector<2x8x8xbf16>
    %47 = arith.truncf %26 : vector<2x8x16xf32> to vector<2x8x16xbf16>
    "tpu.trace_start"() <{level = 10 : i32, message = "hqk,hkd->hqd"}> : () -> ()
    %cst_14 = arith.constant dense<0.000000e+00> : vector<2x8x16xf32>
    %48 = tpu.matmul %46, %47, %cst_14 {dimension_numbers = #tpu.dot_dimension_numbers<[2], [1], [1], [2], [0, 0, 0, 1, 1, 2], [0], [0]>} : vector<2x8x8xbf16>, vector<2x8x16xbf16>, vector<2x8x16xf32> -> vector<2x8x16xf32>
    "tpu.trace_stop"() : () -> ()
    %49 = vector.extract_strided_slice %48 {offsets = [0, 0, 0], sizes = [1, 8, 16], strides = [1, 1, 1]} : vector<2x8x16xf32> to vector<1x8x16xf32>
    %50 = vector.shape_cast %49 : vector<1x8x16xf32> to vector<8x16xf32>
    %c0_15 = arith.constant 0 : index
    %c0_16 = arith.constant 0 : index
    %51 = vector.load %arg14[%c0_15, %c0_16] : memref<8x32xf32, #tpu.memory_space<vmem>>, vector<8x16xf32>
    tpu.vector_store %arg14[%c0_15, %c0_16], %50 {strides = array<i32>} : memref<8x32xf32, #tpu.memory_space<vmem>>, vector<8x16xf32>,
    %52 = vector.extract_strided_slice %48 {offsets = [1, 0, 0], sizes = [1, 8, 16], strides = [1, 1, 1]} : vector<2x8x16xf32> to vector<1x8x16xf32>
    %53 = vector.shape_cast %52 : vector<1x8x16xf32> to vector<8x16xf32>
    %c0_17 = arith.constant 0 : index
    %c16 = arith.constant 16 : index
    %54 = vector.load %arg14[%c0_17, %c16] : memref<8x32xf32, #tpu.memory_space<vmem>>, vector<8x16xf32>
    tpu.vector_store %arg14[%c0_17, %c16], %53 {strides = array<i32>} : memref<8x32xf32, #tpu.memory_space<vmem>>, vector<8x16xf32>,
    %c0_18 = arith.constant 0 : index
    %c0_19 = arith.constant 0 : index
    %c0_20 = arith.constant 0 : index
    %55 = vector.load %arg11[%c0_18, %c0_19, %c0_20] : memref<1x6x32xf32, #tpu.memory_space<vmem>>, vector<1x6x32xf32>
    %56 = vector.shape_cast %55 : vector<1x6x32xf32> to vector<6x32xf32>
    %c0_21 = arith.constant 0 : index
    %c0_22 = arith.constant 0 : index
    %57 = vector.load %arg14[%c0_21, %c0_22] : memref<8x32xf32, #tpu.memory_space<vmem>>, vector<8x32xf32>
    %58 = arith.truncf %57 : vector<8x32xf32> to vector<8x32xbf16>
    %c0_23 = arith.constant 0 : index
    %c0_24 = arith.constant 0 : index
    %c0_25 = arith.constant 0 : index
    %59 = vector.load %arg6[%c0_23, %c0_24, %c0_25] : memref<1x32x32xbf16, #tpu.memory_space<vmem>>, vector<1x32x32xbf16>
    %60 = vector.shape_cast %59 : vector<1x32x32xbf16> to vector<32x32xbf16>
    %cst_26 = arith.constant dense<0.000000e+00> : vector<8x32xf32>
    %61 = tpu.matmul %58, %60, %cst_26 {dimension_numbers = #tpu.dot_dimension_numbers<[1], [0], [0], [1], [0, 0, 1, 1], [], []>} : vector<8x32xbf16>, vector<32x32xbf16>, vector<8x32xf32> -> vector<8x32xf32>
    %62 = vector.extract_strided_slice %56 {offsets = [0, 0], sizes = [1, 32], strides = [1, 1]} : vector<6x32xf32> to vector<1x32xf32>
    %63 = vector.broadcast %62 : vector<1x32xf32> to vector<8x32xf32>
    %64 = arith.addf %61, %63 : vector<8x32xf32>
    %65 = arith.addf %3, %64 : vector<8x32xf32>
    %66 = vector.extract_strided_slice %56 {offsets = [1, 0], sizes = [1, 32], strides = [1, 1]} : vector<6x32xf32> to vector<1x32xf32>
    %67 = vector.extract_strided_slice %56 {offsets = [2, 0], sizes = [1, 32], strides = [1, 1]} : vector<6x32xf32> to vector<1x32xf32>
    %cst_27 = arith.constant dense<0.000000e+00> : vector<8xf32>
    %68 = vector.multi_reduction <add>, %65, %cst_27 [1] : vector<8x32xf32> to vector<8xf32>
    %69 = vector.shape_cast %68 : vector<8xf32> to vector<8x1xf32>
    %cst_28 = arith.constant 3.200000e+01 : f32
    %70 = vector.broadcast %cst_28 : f32 to vector<8x1xf32>
    %71 = arith.divf %69, %70 : vector<8x1xf32>
    %72 = vector.broadcast %71 : vector<8x1xf32> to vector<8x32xf32>
    %73 = arith.subf %65, %72 : vector<8x32xf32>
    %74 = arith.mulf %73, %73 : vector<8x32xf32>
    %cst_29 = arith.constant dense<0.000000e+00> : vector<8xf32>
    %75 = vector.multi_reduction <add>, %74, %cst_29 [1] : vector<8x32xf32> to vector<8xf32>
    %76 = vector.shape_cast %75 : vector<8xf32> to vector<8x1xf32>
    %cst_30 = arith.constant 3.200000e+01 : f32
    %77 = vector.broadcast %cst_30 : f32 to vector<8x1xf32>
    %78 = arith.divf %76, %77 : vector<8x1xf32>
    %79 = vector.broadcast %71 : vector<8x1xf32> to vector<8x32xf32>
    %80 = arith.subf %65, %79 : vector<8x32xf32>
    %cst_31 = arith.constant 9.99999996E-13 : f32
    %81 = vector.broadcast %cst_31 : f32 to vector<8x1xf32>
    %82 = arith.addf %78, %81 : vector<8x1xf32>
    %83 = math.rsqrt %82 : vector<8x1xf32>
    %84 = vector.broadcast %83 : vector<8x1xf32> to vector<8x32xf32>
    %85 = arith.mulf %80, %84 : vector<8x32xf32>
    %86 = vector.broadcast %66 : vector<1x32xf32> to vector<8x32xf32>
    %87 = arith.mulf %85, %86 : vector<8x32xf32>
    %88 = vector.broadcast %67 : vector<1x32xf32> to vector<8x32xf32>
    %89 = arith.addf %87, %88 : vector<8x32xf32>
    %90 = arith.truncf %89 : vector<8x32xf32> to vector<8x32xbf16>
    %c0_32 = arith.constant 0 : index
    %c0_33 = arith.constant 0 : index
    %c0_34 = arith.constant 0 : index
    %91 = vector.load %arg7[%c0_32, %c0_33, %c0_34] : memref<1x32x64xbf16, #tpu.memory_space<vmem>>, vector<1x32x64xbf16>
    %92 = vector.shape_cast %91 : vector<1x32x64xbf16> to vector<32x64xbf16>
    %cst_35 = arith.constant dense<0.000000e+00> : vector<8x64xf32>
    %93 = tpu.matmul %90, %92, %cst_35 {dimension_numbers = #tpu.dot_dimension_numbers<[1], [0], [0], [1], [0, 0, 1, 1], [], []>} : vector<8x32xbf16>, vector<32x64xbf16>, vector<8x64xf32> -> vector<8x64xf32>
    %c0_36 = arith.constant 0 : index
    %c0_37 = arith.constant 0 : index
    %c0_38 = arith.constant 0 : index
    %94 = vector.load %arg10[%c0_36, %c0_37, %c0_38] : memref<1x1x64xf32, #tpu.memory_space<vmem>>, vector<1x1x64xf32>
    %95 = vector.shape_cast %94 : vector<1x1x64xf32> to vector<1x64xf32>
    %96 = vector.broadcast %95 : vector<1x64xf32> to vector<8x64xf32>
    %97 = arith.addf %93, %96 : vector<8x64xf32>
    %98 = arith.mulf %97, %97 : vector<8x64xf32>
    %99 = arith.mulf %97, %98 : vector<8x64xf32>
    %cst_39 = arith.constant 4.471500e-02 : f32
    %100 = vector.broadcast %cst_39 : f32 to vector<8x64xf32>
    %101 = arith.mulf %100, %99 : vector<8x64xf32>
    %102 = arith.addf %97, %101 : vector<8x64xf32>
    %cst_40 = arith.constant 0.797884583 : f32
    %103 = vector.broadcast %cst_40 : f32 to vector<8x64xf32>
    %104 = arith.mulf %103, %102 : vector<8x64xf32>
    %105 = math.tanh %104 : vector<8x64xf32>
    %cst_41 = arith.constant 1.000000e+00 : f32
    %106 = vector.broadcast %cst_41 : f32 to vector<8x64xf32>
    %107 = arith.addf %106, %105 : vector<8x64xf32>
    %cst_42 = arith.constant 5.000000e-01 : f32
    %108 = vector.broadcast %cst_42 : f32 to vector<8x64xf32>
    %109 = arith.mulf %108, %107 : vector<8x64xf32>
    %110 = arith.mulf %97, %109 : vector<8x64xf32>
    %111 = arith.truncf %110 : vector<8x64xf32> to vector<8x64xbf16>
    %c0_43 = arith.constant 0 : index
    %c0_44 = arith.constant 0 : index
    %c0_45 = arith.constant 0 : index
    %112 = vector.load %arg8[%c0_43, %c0_44, %c0_45] : memref<1x64x32xbf16, #tpu.memory_space<vmem>>, vector<1x64x32xbf16>
    %113 = vector.shape_cast %112 : vector<1x64x32xbf16> to vector<64x32xbf16>
    %cst_46 = arith.constant dense<0.000000e+00> : vector<8x32xf32>
    %114 = tpu.matmul %111, %113, %cst_46 {dimension_numbers = #tpu.dot_dimension_numbers<[1], [0], [0], [1], [0, 0, 1, 1], [], []>} : vector<8x64xbf16>, vector<64x32xbf16>, vector<8x32xf32> -> vector<8x32xf32>
    %115 = vector.extract_strided_slice %56 {offsets = [3, 0], sizes = [1, 32], strides = [1, 1]} : vector<6x32xf32> to vector<1x32xf32>
    %116 = vector.broadcast %115 : vector<1x32xf32> to vector<8x32xf32>
    %117 = arith.addf %114, %116 : vector<8x32xf32>
    %118 = arith.addf %89, %117 : vector<8x32xf32>
    %119 = vector.extract_strided_slice %56 {offsets = [4, 0], sizes = [1, 32], strides = [1, 1]} : vector<6x32xf32> to vector<1x32xf32>
    %120 = vector.extract_strided_slice %56 {offsets = [5, 0], sizes = [1, 32], strides = [1, 1]} : vector<6x32xf32> to vector<1x32xf32>
    %cst_47 = arith.constant dense<0.000000e+00> : vector<8xf32>
    %121 = vector.multi_reduction <add>, %118, %cst_47 [1] : vector<8x32xf32> to vector<8xf32>
    %122 = vector.shape_cast %121 : vector<8xf32> to vector<8x1xf32>
    %cst_48 = arith.constant 3.200000e+01 : f32
    %123 = vector.broadcast %cst_48 : f32 to vector<8x1xf32>
    %124 = arith.divf %122, %123 : vector<8x1xf32>
    %125 = vector.broadcast %124 : vector<8x1xf32> to vector<8x32xf32>
    %126 = arith.subf %118, %125 : vector<8x32xf32>
    %127 = arith.mulf %126, %126 : vector<8x32xf32>
    %cst_49 = arith.constant dense<0.000000e+00> : vector<8xf32>
    %128 = vector.multi_reduction <add>, %127, %cst_49 [1] : vector<8x32xf32> to vector<8xf32>
    %129 = vector.shape_cast %128 : vector<8xf32> to vector<8x1xf32>
    %cst_50 = arith.constant 3.200000e+01 : f32
    %130 = vector.broadcast %cst_50 : f32 to vector<8x1xf32>
    %131 = arith.divf %129, %130 : vector<8x1xf32>
    %132 = vector.broadcast %124 : vector<8x1xf32> to vector<8x32xf32>
    %133 = arith.subf %118, %132 : vector<8x32xf32>
    %cst_51 = arith.constant 9.99999996E-13 : f32
    %134 = vector.broadcast %cst_51 : f32 to vector<8x1xf32>
    %135 = arith.addf %131, %134 : vector<8x1xf32>
    %136 = math.rsqrt %135 : vector<8x1xf32>
    %137 = vector.broadcast %136 : vector<8x1xf32> to vector<8x32xf32>
    %138 = arith.mulf %133, %137 : vector<8x32xf32>
    %139 = vector.broadcast %119 : vector<1x32xf32> to vector<8x32xf32>
    %140 = arith.mulf %138, %139 : vector<8x32xf32>
    %141 = vector.broadcast %120 : vector<1x32xf32> to vector<8x32xf32>
    %142 = arith.addf %140, %141 : vector<8x32xf32>
    %c0_52 = arith.constant 0 : index
    %c0_53 = arith.constant 0 : index
    %143 = vector.load %arg13[%c0_52, %c0_53] : memref<8x32xf32, #tpu.memory_space<vmem>>, vector<8x32xf32>
    tpu.vector_store %arg13[%c0_52, %c0_53], %142 {strides = array<i32>} : memref<8x32xf32, #tpu.memory_space<vmem>>, vector<8x32xf32>,
    %c1_i32 = arith.constant 1 : i32
    %144 = arith.cmpi eq, %arg1, %c1_i32 : i32
    %145 = arith.extui %144 : i1 to i32
    %c0_i32_54 = arith.constant 0 : i32
    %146 = arith.cmpi ne, %145, %c0_i32_54 : i32
    scf.if %146 {
      %147 = arith.addf %3, %142 : vector<8x32xf32>
      %cst_55 = arith.constant 5.000000e-01 : f32
      %148 = vector.broadcast %cst_55 : f32 to vector<8x32xf32>
      %149 = arith.mulf %147, %148 : vector<8x32xf32>
      %cst_56 = arith.constant dense<0.000000e+00> : vector<32xf32>
      %150 = vector.multi_reduction <add>, %149, %cst_56 [0] : vector<8x32xf32> to vector<32xf32>
      %151 = vector.shape_cast %150 : vector<32xf32> to vector<1x32xf32>
      %cst_57 = arith.constant 8.000000e+00 : f32
      %152 = vector.broadcast %cst_57 : f32 to vector<1x32xf32>
      %153 = arith.divf %151, %152 : vector<1x32xf32>
      %c0_58 = arith.constant 0 : index
      %c0_59 = arith.constant 0 : index
      %c0_60 = arith.constant 0 : index
      %154 = vector.load %arg12[%c0_58, %c0_59, %c0_60] : memref<1x1x32xf32, #tpu.memory_space<vmem>>, vector<1x1x32xf32>
      %155 = vector.shape_cast %154 : vector<1x1x32xf32> to vector<1x32xf32>
      %156 = vector.shape_cast %153 : vector<1x32xf32> to vector<1x1x32xf32>
      tpu.vector_store %arg12[%c0_58, %c0_59, %c0_60], %156 {strides = array<i32>} : memref<1x1x32xf32, #tpu.memory_space<vmem>>, vector<1x1x32xf32>,
    } else {
    }
    return
  }
  func.func @transform_0(%arg0: i32, %arg1: i32) -> (i32, i32, i32) {
    %c0_i32 = arith.constant 0 : i32
    %c0_i32_0 = arith.constant 0 : i32
    %c0_i32_1 = arith.constant 0 : i32
    return %arg0, %c0_i32, %c0_i32_0 : i32, i32, i32
  }
  func.func @transform_1(%arg0: i32, %arg1: i32) -> (i32, i32, i32) {
    %c0_i32 = arith.constant 0 : i32
    %c0_i32_0 = arith.constant 0 : i32
    %c0_i32_1 = arith.constant 0 : i32
    return %arg0, %c0_i32, %c0_i32_0 : i32, i32, i32
  }
  func.func @transform_2(%arg0: i32, %arg1: i32) -> (i32, i32) {
    %c0_i32 = arith.constant 0 : i32
    %c0_i32_0 = arith.constant 0 : i32
    %c0_i32_1 = arith.constant 0 : i32
    return %c0_i32, %c0_i32_0 : i32, i32
  }
  func.func @transform_3(%arg0: i32, %arg1: i32) -> (i32, i32, i32) {
    %c0_i32 = arith.constant 0 : i32
    %c0_i32_0 = arith.constant 0 : i32
    %c0_i32_1 = arith.constant 0 : i32
    return %arg1, %c0_i32, %c0_i32_0 : i32, i32, i32
  }
  func.func @transform_4(%arg0: i32, %arg1: i32) -> (i32, i32, i32) {
    %c0_i32 = arith.constant 0 : i32
    %c0_i32_0 = arith.constant 0 : i32
    %c0_i32_1 = arith.constant 0 : i32
    return %arg1, %c0_i32, %c0_i32_0 : i32, i32, i32
  }
  func.func @transform_5(%arg0: i32, %arg1: i32) -> (i32, i32, i32) {
    %c0_i32 = arith.constant 0 : i32
    %c0_i32_0 = arith.constant 0 : i32
    %c0_i32_1 = arith.constant 0 : i32
    return %arg1, %c0_i32, %c0_i32_0 : i32, i32, i32
  }
  func.func @transform_6(%arg0: i32, %arg1: i32) -> (i32, i32, i32) {
    %c0_i32 = arith.constant 0 : i32
    %c0_i32_0 = arith.constant 0 : i32
    %c0_i32_1 = arith.constant 0 : i32
    return %arg1, %c0_i32, %c0_i32_0 : i32, i32, i32
  }
  func.func @transform_7(%arg0: i32, %arg1: i32) -> (i32, i32, i32) {
    %c0_i32 = arith.constant 0 : i32
    %c0_i32_0 = arith.constant 0 : i32
    %c0_i32_1 = arith.constant 0 : i32
    return %arg1, %c0_i32, %c0_i32_0 : i32, i32, i32
  }
  func.func @transform_8(%arg0: i32, %arg1: i32) -> (i32, i32, i32) {
    %c0_i32 = arith.constant 0 : i32
    %c0_i32_0 = arith.constant 0 : i32
    %c0_i32_1 = arith.constant 0 : i32
    return %arg1, %c0_i32, %c0_i32_0 : i32, i32, i32
  }
  func.func @transform_9(%arg0: i32, %arg1: i32) -> (i32, i32, i32) {
    %c0_i32 = arith.constant 0 : i32
    %c0_i32_0 = arith.constant 0 : i32
    %c0_i32_1 = arith.constant 0 : i32
    return %arg1, %c0_i32, %c0_i32_0 : i32, i32, i32
  }
  func.func @transform_10(%arg0: i32, %arg1: i32) -> (i32, i32, i32) {
    %c0_i32 = arith.constant 0 : i32
    %c0_i32_0 = arith.constant 0 : i32
    %c0_i32_1 = arith.constant 0 : i32
    return %arg0, %c0_i32, %c0_i32_0 : i32, i32, i32
  }
}

</mosaic_0001>

<bundles_post_ra>
// kernel: gte_forward.1
= control target key start
LH: loop header
LB: loop body
LE: loop exit
PB: predicated region body
PF: predicated region fallthrough
CT: control target
= control target key end

     0   :  { %s1978_s0 = inlined_call_operand.vmem [shape: f32[2,8,32], index: 0, kind: input, shape index: {}]   ;;  %s1979_s1 = inlined_call_operand.vmem [shape: f32[2,1,8], index: 1, kind: input, shape index: {}]   ;;  %s1980_s2 = inlined_call_operand.vmem [shape: f32[2,32], index: 2, kind: input, shape index: {}]   ;;  %s1981_s3 = inlined_call_operand.vmem [shape: bf16[2,32,96], index: 3, kind: input, shape index: {}]   ;;  %s1982_s4 = inlined_call_operand.vmem [shape: bf16[2,32,32], index: 4, kind: input, shape index: {}]   ;;  %s1983_s5 = inlined_call_operand.vmem [shape: bf16[2,32,64], index: 5, kind: input, shape index: {}]   ;;  %s1984_s6 = inlined_call_operand.vmem [shape: bf16[2,64,32], index: 6, kind: input, shape index: {}]   ;;  %s1985_s7 = inlined_call_operand.vmem [shape: f32[2,1,96], index: 7, kind: input, shape index: {}]   ;;  %s1986_s8 = inlined_call_operand.vmem [shape: f32[2,1,64], index: 8, kind: input, shape index: {}]   ;;  %s1987_s9 = inlined_call_operand.vmem [shape: f32[2,6,32], index: 9, kind: input, shape index: {}]   ;;  %s1988_s10 = inlined_call_operand.hbm [shape: f32[2,1,32], index: 10, kind: output, shape index: {}]  }
   0x1   :  { %2000 = sst [smem:[#allocation18_spill]] %s1978_s0 }
   0x2   :  { %2001 = sst [smem:[#allocation19_spill]] %s1979_s1 }
   0x3   :  { %2002 = sst [smem:[#allocation20_spill]] %s1981_s3 }
   0x4   :  { %2003 = sst [smem:[#allocation21_spill]] %s1982_s4 }
   0x5   :  { %2004 = sst [smem:[#allocation22_spill]] %s1988_s10 }
   0x6   :  { %15 = vsyncpa [#allocation6], 0 }
   0x7   :  { %17 = vsyncpa [#allocation6 + $0x1], 0  ;;  %s1702_s13 = smov 0   ;;  %s1704_s14 = smov 0  }
   0x8   :  { %s1706_s15 = smov 0   ;;  %s1708_s16 = smov 0  }
   0x9   :  { %s1710_s17 = smov 0   ;;  %s1712_s18 = smov 0  }
   0xa   :  { %s1714_s19 = smov 0   ;;  %s1716_s20 = smov 0  }
   0xb LB: > { %2005 = sst [smem:[#allocation8_spill]] %s1610_s13  ;;  %s1314_s21 = sadd.s32 4294967295, %s1638_s20   ;;  %s1638_s20 = sphi %s1716_s20, %s23_s20   ;;  %s1634_s19 = sphi %s1714_s19, %s2034_s19   ;;  %s1630_s18 = sphi %s1712_s18, %s2033_s18   ;;  %s1626_s17 = sphi %s1710_s17, %s2032_s17   ;;  %s1622_s16 = sphi %s1708_s16, %s2031_s16   ;;  %s1618_s15 = sphi %s1706_s15, %s2030_s15   ;;  %s1614_s14 = sphi %s1704_s14, %s2036_s14   ;;  %s1610_s13 = sphi %s1702_s13, %s2035_s13  }
   0xc   : > { %2006 = sst [smem:[#allocation9_spill]] %s1618_s15  ;;  %s1315_s22 = sadd.s32 4294967294, %s1638_s20  }
   0xd   : > { %2007 = sst [smem:[#allocation10_spill]] %s1630_s18  ;;  %s32_s23 = sadd.s32 1, %s1630_s18 }
   0xe   : > { %2008 = sst [smem:[#allocation11_spill]] %s1634_s19  ;;  %p33_p0 = scmp.ge.s32.totalorder %s32_s23, 2 }
   0xf   : > { %2009 = sst [smem:[#allocation12_spill]] %s1638_s20  ;;  %s35_s24 = sadd.s32 1, %s1634_s19 }
  0x10   : > { %p307_p1 = scmp.ne.s32.totalorder %s1618_s15, %s1614_s14  ;;  %p308_p2 = scmp.eq.s32.totalorder %s1314_s21, 3 }
  0x11   : > { %s2038_s23 = smov (%p33_p0, %s32_s23), 0  ;;  %s2040_s24 = smov (!%p33_p0, %s35_s24), %s1634_s19 }
  0x12   : > { %2010 = sst [smem:[#allocation13_spill]] %s2038_s23  ;;  %p1751_p3 = por %p308_p2, %p307_p1 }
  0x13   : > { %p313_p4 = scmp.ne.s32.totalorder %s1614_s14, %s1610_s13  ;;  %p37_p5 = scmp.ge.s32.totalorder %s2040_s24, 2 }
  0x14   : > { %s2011_s25 = scalar_select %p1751_p3, 1, 0 }
  0x15   : > { %p314_p6 = scmp.eq.s32.totalorder %s1315_s22, 3  ;;  %p1318_p7 = scmp.ge.s32.totalorder %s1638_s20, 1 }
  0x16   : > { %2012 = sst [smem:[#allocation14_spill]] %s2011_s25  ;;  %p399_p8 = scmp.lt.s32.totalorder %s1638_s20, 5 }
  0x17   : > { %s2042_s24 = smov (%p37_p5, %s2040_s24), 0  ;;  %p1761_p9 = por %p314_p6, %p313_p4 }
  0x18   : > { %2013 = sst [smem:[#allocation15_spill]] %s2042_s24  ;;  %p400_p10 = pnand %p1318_p7, %p399_p8 }
  0x19   : > { %s2014_s26 = scalar_select %p1761_p9, 1, 0 }
  0x1a   : > { %s294_s27 = ssub.s32 %s1634_s19, %s2042_s24  ;;  %s297_s28 = sadd.s32 1, %s1618_s15 }
  0x1b   : > { %2015 = sst [smem:[#allocation16_spill]] %s2014_s26  ;;  %p295_p11 = scmp.eq.s32.totalorder %s294_s27, 0 }
  0x1c   : > { %403 = sbr.rel (%p400_p10) target bundleno = 2916 (0xb64), region = 60  ;;  %p468_p12 = scmp.lt.s32.totalorder (!%p400_p10), %s1626_s17, 1 }
  0x1d   : > { %s1769_s29 = scalar_select %p295_p11, %s1618_s15, %s297_s28  }
  0x1e   : > { %p475_p13 = scmp.lt.s32.totalorder (!%p400_p10), %s1622_s16, 1  ;;  %s2017_s1 = sld [smem:[#allocation19_spill]] (!%p400_p10) }
  0x1f   : > { %2016 = sst [smem:[#allocation17_spill]] %s1769_s29  ;;  %p1329_p0 = scmp.ne.s32.totalorder (!%p400_p10), %s1622_s16, 0 }
  0x20   : > { %s2018_s0 = sld [smem:[#allocation18_spill]] (!%p400_p10) }
  0x21   : > { %s469_s11 = scalar_select %p468_p12, %s1626_s17, 1 }
  0x22   : > { %s1776_s12 = scalar_select %p475_p13, %s1622_s16, 1 }
  0x23   : > { %s1319_s21 = sshll.u32 %s469_s11, 3  ;;  %s2019_s3 = sld [smem:[#allocation20_spill]] }
  0x24   : > { %s474_s28 = scalar_lea.vmem %s2017_s1, %s469_s11  ;;  %s1357_s19 = sshll.u32 %s1776_s12, 4 }
  0x25   : > { %s2020_s4 = sld [smem:[#allocation21_spill]]  ;;  %s1798_s22 = scalar_lea.vmem %s1983_s5, %s1357_s19 }
  0x26   : > { %s471_s30 = scalar_lea.vmem %s2018_s0, %s1319_s21  ;;  %s1360_s11 = sshll.u32 %s1776_s12, 5 }
  0x27   : > { %s1804_s24 = scalar_lea.vmem %s1984_s6, %s1360_s11  ;;  %s497_s29 = scalar_lea.vmem %s1985_s7, %s1776_s12 }
  0x28   : > { %s500_s13 = scalar_lea.vmem %s1986_s8, %s1776_s12  ;;  %s1328_s26 = sshll.u32 %s1776_s12, 3 }
  0x29   : > { %s1788_s15 = scalar_lea.vmem %s2019_s3, %s1357_s19  ;;  %s1818_s10 = scalar_lea.vmem %s1987_s9, %s1328_s26 }
  0x2a   : > { %509 = sbr.rel (%p1329_p0) target bundleno = 357 (0x165), region = 64 }
  0x2b   : > { %s1793_s20 = scalar_lea.vmem %s2020_s4, %s1357_s19  ;;  %s2021_s19 = sand.u32 1, %s1614_s14  }
  0x2c   : > { %s1822_s25 = scalar_lea.vmem [#allocation5], %s2021_s19 }
  0x2f   : > { %v510_v0 = vld [vmem:[%s471_s30] sm:$0xff]  ;;  %vm513_vm0 = vcmask 261120   ;;  %vm542_vm1 = vcmask 57344  }
  0x30   : > { %v514_v1 = vsel %vm513_vm0, %v510_v0, 0.0  ;;  %v539_v7 = vld [vmem:[%s474_s28] sm:$0x1]  ;;  %v1331_v16 = vld [vmem:[%s1980_s2 + $0x1] ss:$0 sm:$0xff] }
  0x31   : > { %515 = vadd.xlane.f32.xlu0 %v514_v1  ;;  %v540_v8 = vsub.f32 1.0, %v539_v7  ;;  %v1330_v14 = vld [vmem:[%s1980_s2] ss:$0 sm:$0xff] }
  0x33   : > { %v541_v9 = vmul.f32 -1e+09, %v540_v8 }
  0x35   : > { %543 = vst.msk [vmem:[#allocation4] sm:$0x1] %vm542_vm1, %v541_v9 }
  0xba   : > { %v516_v2 = vpop.xlane.xlu0 %515 }
  0xbb   : > { %v518_v3 = vmul.f32 0.03125, %v516_v2 }
  0xbd   : > { %v519_v4 = vsub.f32 %v510_v0, %v518_v3 }
  0xbf   : > { %v520_v5 = vmul.f32 %v519_v4, %v519_v4 }
  0xc1   : > { %v521_v6 = vsel %vm513_vm0, %v520_v5, 0.0 }
  0xc2   : > { %522 = vadd.xlane.f32.xlu0 %v521_v6 }
 0x14b   : > { %v523_v10 = vpop.xlane.xlu0 %522 }
 0x14c   : > { %v524_v11 = vmul.f32 0.03125, %v523_v10 }
 0x14e   : > { %v525_v12 = vadd.f32 1e-12, %v524_v11 }
 0x150   : > { %1520 = vrsqrt.f32 %v525_v12 }
 0x15d   : > { %v1521_v13 = vpop.eup %1520 }
 0x15e   : > { %v527_v15 = vmul.f32 %v1521_v13, %v519_v4 }
 0x160   : > { %v532_v17 = vmul.f32 %v1330_v14, %v527_v15 }
 0x162   : > { %v537_v18 = vadd.f32 %v1331_v16, %v532_v17 }
 0x164   : > { %538 = vst.msk [vmem:[#allocation2] sm:$0xff] %vm513_vm0, %v537_v18 }
 0x165 PF: > { %v1522_v19 = vld [vmem:[%s1788_s15 + $0x8] sm:$0xff]   ;;  %v1640_v20 = vmov 0.0   ;;  %v1523_v21 = vld [vmem:[%s1788_s15] sm:$0xff]   ;;  %vm1641_vm2 = vmmov 0   ;;  %vm569_vm3 = vcmask 261120   ;;  %s1642_s28 = smov 112  }
 0x166   : > { %1383 = vmatprep.subr.bf16.mxu0 %v1640_v20  ;;  %1391 = vmatprep.subr.bf16.mxu1 %v1640_v20  ;;  %v1332_v24 = vld [vmem:[%s497_s29] ss:$0 sm:$0xff]  ;;  %s1643_s11 = smov 96   ;;  %vm623_vm4 = vcmask 130048   ;;  %v1338_v38 = vld [vmem:[#allocation4] ss:$0 sm:$0xff] }
 0x167   : > { %1384 = vmatpush3.bf16.msra.mxu0 %v1522_v19  ;;  %1387 = vmatprep.mubr.msk.bf16.mxu0 %vm1641_vm2, %v1640_v20  ;;  %vm729_vm5 = vcmask 64512   ;;  %s1644_s27 = smov 64   ;;  %vm759_vm6 = vcmask 1043456   ;;  %v1524_v10 = vld [vmem:[%s1793_s20 + $0x8] sm:$0xff]   ;;  %v1525_v11 = vld [vmem:[%s1793_s20] sm:$0xff]   ;;  %s1645_s23 = smov 16  }
 0x168   : > { %1385 = vmatprep.subr.bf16.mxu0 %v1640_v20  ;;  %1393 = vmatprep.mubr.msk.bf16.mxu1 %vm1641_vm2, %v1640_v20  ;;  %vm856_vm7 = vcmask 261248   ;;  %vm1062_vm8 = vcmask 523264   ;;  %p1353_p1 = scmp.ne.s32.totalorder %s1622_s16, 1 }
 0x16b   : > { %v1840_v22 = vld [vmem:[#allocation2] sm:$0xff]  ;;  %1386 = vmatpush3.bf16.msra.mxu0 %v1523_v21 }
 0x16c   : > { %v545_v23 = vpack.c.bf16 %v1840_v22, %v1840_v22  ;;  %1397 = vmatprep.subr.bf16.mxu0 %v1640_v20 }
 0x16e   : > { %1388 = vmatmul.mubr.msk.bf16.vlgmr.msra.gmra.mxu0 %vm569_vm3, %v545_v23 }
 0x16f   : > { %1399 = vmatprep.mubr.msk.bf16.mxu0 %vm1641_vm2, %v1640_v20 }
 0x22e   : > { %v607_v25 = vpop.f32.mrf.mxu0 }
 0x22f   : > { %v608_v26 = vadd.f32 %v1332_v24, %v607_v25  ;;  %v865_v25 = vlaneseq }
 0x230   : > { %v1389_v27 = vpop.f32.mrf.mxu0 }
 0x231   : > { %v618_v28 = vpack.c.bf16 %v608_v26, %v608_v26  ;;  %614 = vrot.lane.b32.xlu0 %v608_v26, %s1642_s28  ;;  %v1888_v26 = vshrl.u32 %v865_v25, 7 }
 0x232   : > { %v610_v29 = vpop.f32.mrf.mxu0 }
 0x233   : > { %621 = vrot.lane.b32.xlu1 %v618_v28, %s1643_s11  ;;  %v867_v27 = vsub.s32 0, %v1888_v26 }
 0x234   : > { %v1390_v30 = vpop.f32.mrf.mxu0 }
 0x2a3   : > { %v615_v31 = vpop.permute.xlu0 %614 }
 0x2a4   : > { %v619_v32 = vpack.c.bf16 %v615_v31, %v615_v31 }
 0x2a5   : > { %v622_v33 = vpop.permute.xlu1 %621 }
 0x2a6   : > { %671 = vrot.lane.b32.xlu0 %v619_v32, %s1643_s11  ;;  %v628_v34 = vsel %vm623_vm4, %v622_v33, 0 }
 0x2a7   : > { %1392 = vmatpush3.bf16.xpose.msra.mxu1 %v628_v34 }
 0x2a8   : > { %1403 = vmatprep.subr.bf16.mxu1 %v1640_v20 }
 0x2ae   : > { %1394 = vmatmul.mubr.msk.bf16.vlgmr.msra.gmra.mxu1 %vm623_vm4, %v618_v28 }
 0x2af   : > { %1405 = vmatprep.mubr.msk.bf16.mxu1 %vm1641_vm2, %v1640_v20 }
 0x318   : > { %v672_v35 = vpop.permute.xlu0 %671 }
 0x319   : > { %v677_v36 = vsel %vm623_vm4, %v672_v35, 0 }
 0x31a   : > { %1398 = vmatpush3.bf16.xpose.msra.mxu0 %v677_v36 }
 0x31b   : > { %1409 = vmatprep.subr.bf16.mxu0 %v1640_v20 }
 0x321   : > { %1400 = vmatmul.mubr.msk.bf16.vlgmr.msra.gmra.mxu0 %vm623_vm4, %v619_v32 }
 0x322   : > { %1411 = vmatprep.mubr.msk.bf16.mxu0 %vm1641_vm2, %v1640_v20 }
 0x36e   : > { %v664_v37 = vpop.f32.mrf.mxu1 }
 0x36f   : > { %v719_v39 = vmul.f32 0.25, %v664_v37 }
 0x370   : > { %v1395_v40 = vpop.f32.mrf.mxu1 }
 0x371   : > { %v727_v41 = vadd.f32 %v1338_v38, %v719_v39 }
 0x372   : > { %v667_v42 = vpop.f32.mrf.mxu1 }
 0x373   : > { %v730_v43 = vsel %vm729_vm5, %v727_v41, -inf  ;;  %v1526_v42 = vld [vmem:[%s1798_s22 + $0x8] sm:$0xff]  }
 0x374   : > { %731 = vmax.xlane.f32.xlu0 %v730_v43  ;;  %v1396_v44 = vpop.f32.mrf.mxu1  ;;  %v1527_v43 = vld [vmem:[%s1798_s22] sm:$0xff]  }
 0x3e1   : > { %v713_v45 = vpop.f32.mrf.mxu0 }
 0x3e2   : > { %v720_v46 = vmul.f32 0.25, %v713_v45 }
 0x3e3   : > { %v1401_v47 = vpop.f32.mrf.mxu0 }
 0x3e4   : > { %v728_v48 = vadd.f32 %v1338_v38, %v720_v46  ;;  %v941_v47 = vsub.s32 1, %v1888_v26 }
 0x3e5   : > { %v716_v49 = vpop.f32.mrf.mxu0 }
 0x3e6   : > { %v733_v50 = vsel %vm729_vm5, %v728_v48, -inf }
 0x3e7   : > { %734 = vmax.xlane.f32.xlu1 %v733_v50  ;;  %v1402_v51 = vpop.f32.mrf.mxu0 }
 0x3f8   : > { %803 = vrot.lane.b32.xlu1 %v619_v32, %s1644_s27 }
 0x3fd   : > { %v732_v52 = vpop.xlane.xlu0 %731 }
 0x3fe   : > { %v736_v53 = vsub.f32 %v727_v41, %v732_v52 }
 0x400   : > { %v738_v56 = vmul.f32 1.442695, %v736_v53 }
 0x470   : > { %v735_v54 = vpop.xlane.xlu1 %734 }
 0x471   : > { %v737_v55 = vsub.f32 %v728_v48, %v735_v54  ;;  %v946_v48 = vsub.s32 2, %v1888_v26 }
 0x473   : > { %v740_v57 = vmul.f32 1.442695, %v737_v55 }
 0x474   : > { %v804_v58 = vpop.permute.xlu1 %803 }
 0x475   : > { %1532 = vpow2.f32 %v740_v57  ;;  %v809_v59 = vsel %vm759_vm6, %v804_v58, 0  ;;  %v1529_v57 = vld [vmem:[%s1804_s24 + $0x10] sm:$0xff]   ;;  %v1530_v58 = vld [vmem:[%s1804_s24 + $0x8] sm:$0xff]  }
 0x476   : > { %1410 = vmatpush3.bf16.msra.mxu0 %v809_v59  ;;  %1534 = vpow2.f32 %v738_v56  ;;  %v1528_v56 = vld [vmem:[%s1804_s24 + $0x18] sm:$0xff]   ;;  %v1531_v59 = vld [vmem:[%s1804_s24] sm:$0xff]  }
 0x477   : > { %1423 = vmatprep.subr.bf16.mxu0 %v1640_v20 }
 0x482   : > { %v1533_v60 = vpop.eup %1532 }
 0x483   : > { %v745_v61 = vsel %vm729_vm5, %v1533_v60, 0.0  ;;  %v1535_v62 = vpop.eup %1534 }
 0x484   : > { %746 = vadd.xlane.f32.xlu0 %v745_v61  ;;  %v742_v63 = vsel %vm729_vm5, %v1535_v62, 0.0 }
 0x488   : > { %743 = vadd.xlane.f32.xlu0 %v742_v63 }
 0x49e   : > { %754 = vrot.lane.b32.xlu0 %v618_v28, %s1644_s27  ;;  %v1892_v28 = vld [vmem:[%s1818_s10] sm:$0x3f] }
 0x49f   : > { %v868_v29 = vrot.slane %v1892_v28, %v867_v27  ;;  %v942_v49 = vrot.slane %v1892_v28, %v941_v47  ;;  %v947_v52 = vrot.slane %v1892_v28, %v946_v48 }
 0x50d   : > { %v747_v0 = vpop.xlane.xlu0 %746 }
 0x50e   : > { %1536 = vrcp.f32 %v747_v0 }
 0x511   : > { %v744_v1 = vpop.xlane.xlu0 %743 }
 0x512   : > { %1538 = vrcp.f32 %v744_v1 }
 0x515   : > { %v755_v2 = vpop.permute.xlu0 %754 }
 0x516   : > { %v761_v3 = vsel %vm759_vm6, %v755_v2, 0 }
 0x517   : > { %1404 = vmatpush3.bf16.msra.mxu1 %v761_v3 }
 0x518   : > { %1415 = vmatprep.subr.bf16.mxu1 %v1640_v20 }
 0x51b   : > { %v1537_v4 = vpop.eup %1536 }
 0x51c   : > { %v751_v5 = vmul.f32 %v1537_v4, %v1533_v60  ;;  %v1344_v60 = vld [vmem:[%s500_s13] ss:$0 sm:$0xff] }
 0x51e   : > { %v753_v6 = vpack.c.bf16 %v751_v5, %v751_v5 }
 0x51f   : > { %v1539_v7 = vpop.eup %1538 }
 0x520   : > { %1412 = vmatmul.mubr.msk.bf16.vlgmr.msra.gmra.mxu0 %vm729_vm5, %v753_v6  ;;  %v750_v8 = vmul.f32 %v1539_v7, %v1535_v62 }
 0x521   : > { %1427 = vmatprep.mubr.msk.bf16.mxu0 %vm1641_vm2, %v1640_v20  ;;  %1424 = vmatpush3.bf16.msra.mxu0 %v1526_v42 }
 0x522   : > { %v752_v9 = vpack.c.bf16 %v750_v8, %v750_v8  ;;  %1425 = vmatprep.subr.bf16.mxu0 %v1640_v20 }
 0x524   : > { %1406 = vmatmul.mubr.msk.bf16.vlgmr.msra.gmra.mxu1 %vm729_vm5, %v752_v9 }
 0x525   : > { %1419 = vmatprep.mubr.msk.bf16.mxu1 %vm1641_vm2, %v1640_v20  ;;  %1416 = vmatpush3.bf16.msra.mxu1 %v1524_v10 }
 0x526   : > { %1417 = vmatprep.subr.bf16.mxu1 %v1640_v20  ;;  %1426 = vmatpush3.bf16.msra.mxu0 %v1527_v43 }
 0x529   : > { %1418 = vmatpush3.bf16.msra.mxu1 %v1525_v11  ;;  %v1036_v11 = vsub.s32 3, %v1888_v26 }
 0x52a   : > { %1431 = vmatprep.subr.bf16.mxu1 %v1640_v20 }
 0x5e0   : > { %v845_v12 = vpop.f32.mrf.mxu0 }
 0x5e1   : > { %853 = vrot.lane.b32.xlu1 %v845_v12, %s1645_s23  ;;  %v1037_v12 = vrot.slane %v1892_v28, %v1036_v11 }
 0x5e2   : > { %v1413_v13 = vpop.f32.mrf.mxu0 }
 0x5e4   : > { %v797_v14 = vpop.f32.mrf.mxu1  ;;  %v848_v15 = vpop.f32.mrf.mxu0 }
 0x5e5   : > { %851 = vst.msk [vmem:[#allocation3] sm:$0xff] %vm623_vm4, %v797_v14 }
 0x5e6   : > { %v1407_v16 = vpop.f32.mrf.mxu1  ;;  %v1414_v17 = vpop.f32.mrf.mxu0 }
 0x5e8   : > { %v800_v18 = vpop.f32.mrf.mxu1 }
 0x5ea   : > { %v1408_v19 = vpop.f32.mrf.mxu1 }
 0x653   : > { %v854_v21 = vpop.permute.xlu1 %853 }
 0x654   : > { %857 = vst.msk [vmem:[#allocation3] sm:$0xff] %vm856_vm7, %v854_v21 }
 0x65b   : > { %v859_v23 = vld [vmem:[#allocation3] sm:$0xff] }
 0x65c   : > { %v860_v24 = vpack.c.bf16 %v859_v23, %v859_v23 }
 0x65e   : > { %1420 = vmatmul.mubr.msk.bf16.vlgmr.msra.gmra.mxu1 %vm569_vm3, %v860_v24 }
 0x65f   : > { %1439 = vmatprep.mubr.msk.bf16.mxu1 %vm1641_vm2, %v1640_v20  ;;  %1432 = vmatpush3.bf16.msra.mxu1 %v1528_v56 }
 0x660   : > { %1433 = vmatprep.subr.bf16.mxu1 %v1640_v20 }
 0x663   : > { %1434 = vmatpush3.bf16.msra.mxu1 %v1529_v57 }
 0x664   : > { %1435 = vmatprep.subr.bf16.mxu1 %v1640_v20 }
 0x667   : > { %1436 = vmatpush3.bf16.msra.mxu1 %v1530_v58 }
 0x668   : > { %1437 = vmatprep.subr.bf16.mxu1 %v1640_v20 }
 0x66b   : > { %1438 = vmatpush3.bf16.msra.mxu1 %v1531_v59 }
 0x71e   : > { %v918_v30 = vpop.f32.mrf.mxu1 }
 0x71f   : > { %v919_v31 = vadd.f32 %v918_v30, %v868_v29 }
 0x720   : > { %v1421_v32 = vpop.f32.mrf.mxu1 }
 0x721   : > { %v924_v33 = vadd.f32 %v919_v31, %v1840_v22  ;;  %v1122_v32 = vsub.s32 4, %v1888_v26 }
 0x722   : > { %v921_v34 = vpop.f32.mrf.mxu1 }
 0x723   : > { %v925_v35 = vsel %vm569_vm3, %v924_v33, 0.0  ;;  %v1123_v34 = vrot.slane %v1892_v28, %v1122_v32 }
 0x724   : > { %926 = vadd.xlane.f32.xlu1 %v925_v35  ;;  %v1422_v36 = vpop.f32.mrf.mxu1 }
 0x7ad   : > { %v927_v37 = vpop.xlane.xlu1 %926 }
 0x7ae   : > { %v929_v38 = vmul.f32 0.03125, %v927_v37 }
 0x7b0   : > { %v930_v39 = vsub.f32 %v924_v33, %v929_v38  ;;  %v1127_v33 = vsub.s32 5, %v1888_v26 }
 0x7b2   : > { %v931_v40 = vmul.f32 %v930_v39, %v930_v39  ;;  %v1128_v36 = vrot.slane %v1892_v28, %v1127_v33 }
 0x7b4   : > { %v932_v41 = vsel %vm569_vm3, %v931_v40, 0.0 }
 0x7b5   : > { %933 = vadd.xlane.f32.xlu0 %v932_v41 }
 0x83e   : > { %v934_v44 = vpop.xlane.xlu0 %933 }
 0x83f   : > { %v935_v45 = vmul.f32 0.03125, %v934_v44 }
 0x841   : > { %v936_v46 = vadd.f32 1e-12, %v935_v45 }
 0x843   : > { %1540 = vrsqrt.f32 %v936_v46 }
 0x850   : > { %v1541_v50 = vpop.eup %1540 }
 0x851   : > { %v938_v51 = vmul.f32 %v1541_v50, %v930_v39 }
 0x853   : > { %v943_v53 = vmul.f32 %v942_v49, %v938_v51 }
 0x855   : > { %v948_v54 = vadd.f32 %v947_v52, %v943_v53 }
 0x857   : > { %v949_v55 = vpack.c.bf16 %v948_v54, %v948_v54 }
 0x859   : > { %1428 = vmatmul.mubr.msk.bf16.vlgmr.msra.gmra.mxu0 %vm569_vm3, %v949_v55 }
 0x919   : > { %v1010_v61 = vpop.f32.mrf.mxu0 }
 0x91a   : > { %v1011_v62 = vadd.f32 %v1344_v60, %v1010_v61 }
 0x91b   : > { %v1429_v63 = vpop.f32.mrf.mxu0 }
 0x91c   : > { %v1016_v0 = vmul.f32 %v1011_v62, %v1011_v62 }
 0x91d   : > { %v1013_v1 = vpop.f32.mrf.mxu0 }
 0x91e   : > { %v1017_v2 = vmul.f32 %v1016_v0, %v1011_v62 }
 0x91f   : > { %v1430_v3 = vpop.f32.mrf.mxu0 }
 0x920   : > { %v1018_v4 = vmul.f32 0.044715, %v1017_v2 }
 0x922   : > { %v1019_v5 = vadd.f32 %v1018_v4, %v1011_v62 }
 0x924   : > { %v1020_v6 = vmul.f32 0.7978846, %v1019_v5 }
 0x926   : > { %1542 = vtanh.f32 %v1020_v6 }
 0x933   : > { %v1543_v7 = vpop.eup %1542 }
 0x934   : > { %v1022_v20 = vadd.f32 1.0, %v1543_v7 }
 0x936   : > { %v1023_v8 = vmul.f32 0.5, %v1022_v20 }
 0x938   : > { %v1024_v9 = vmul.f32 %v1023_v8, %v1011_v62 }
 0x93a   : > { %v1025_v10 = vpack.c.bf16 %v1024_v9, %v1024_v9 }
 0x93c   : > { %1440 = vmatmul.mubr.msk.bf16.vlgmr.msra.gmra.mxu1 %vm1062_vm8, %v1025_v10 }
 0x9fc   : > { %v1100_v13 = vpop.f32.mrf.mxu1 }
 0x9fd   : > { %v1101_v14 = vadd.f32 %v1100_v13, %v1037_v12 }
 0x9fe   : > { %v1441_v15 = vpop.f32.mrf.mxu1 }
 0x9ff   : > { %v1106_v16 = vadd.f32 %v1101_v14, %v948_v54 }
 0xa00   : > { %v1103_v17 = vpop.f32.mrf.mxu1 }
 0xa01   : > { %v1107_v18 = vsel %vm569_vm3, %v1106_v16, 0.0 }
 0xa02   : > { %1108 = vadd.xlane.f32.xlu1 %v1107_v18  ;;  %v1442_v19 = vpop.f32.mrf.mxu1 }
 0xa8b   : > { %v1109_v21 = vpop.xlane.xlu1 %1108 }
 0xa8c   : > { %v1110_v23 = vmul.f32 0.03125, %v1109_v21 }
 0xa8e   : > { %v1111_v24 = vsub.f32 %v1106_v16, %v1110_v23 }
 0xa90   : > { %v1112_v25 = vmul.f32 %v1111_v24, %v1111_v24 }
 0xa92   : > { %v1113_v27 = vsel %vm569_vm3, %v1112_v25, 0.0 }
 0xa93   : > { %1114 = vadd.xlane.f32.xlu0 %v1113_v27 }
 0xb1c   : > { %v1115_v29 = vpop.xlane.xlu0 %1114 }
 0xb1d   : > { %v1116_v30 = vmul.f32 0.03125, %v1115_v29 }
 0xb1f   : > { %v1117_v31 = vadd.f32 1e-12, %v1116_v30 }
 0xb21   : > { %1544 = vrsqrt.f32 %v1117_v31 }
 0xb2e   : > { %v1545_v35 = vpop.eup %1544 }
 0xb2f   : > { %v1119_v37 = vmul.f32 %v1545_v35, %v1111_v24 }
 0xb31   : > { %v1124_v38 = vmul.f32 %v1123_v34, %v1119_v37  ;;  %1134 = sbr.rel (%p1353_p1) target bundleno = 2890 (0xb4a), region = 68 }
 0xb33   : > { %v1129_v39 = vadd.f32 %v1128_v36, %v1124_v38 }
 0xb35   : > { %1130 = vst.msk [vmem:[#allocation2] sm:$0xff] %vm569_vm3, %v1129_v39 }
 0xb36   : > { %v1135_v40 = vadd.f32 %v1129_v39, %v1840_v22  ;;  %vm1146_vm9 = vcmask 253952  }
 0xb38   : > { %v1136_v41 = vmul.f32 0.5, %v1135_v40 }
 0xb3a   : > { %v1137_v42 = vsel %vm569_vm3, %v1136_v41, 0.0 }
 0xb3b   : > { %v1138_v26 = vrot.slane %v1137_v42, 4 }
 0xb3d   : > { %v1139_v43 = vadd.f32 %v1138_v26, %v1137_v42 }
 0xb3f   : > { %v1140_v44 = vrot.slane %v1139_v43, 2 }
 0xb41   : > { %v1141_v45 = vadd.f32 %v1140_v44, %v1139_v43 }
 0xb43   : > { %v1142_v46 = vrot.slane %v1141_v45, 1 }
 0xb45   : > { %v1143_v28 = vadd.f32 %v1142_v46, %v1141_v45 }
 0xb47   : > { %v1145_v47 = vmul.f32 0.125, %v1143_v28 }
 0xb49   : > { %1147 = vst.msk [vmem:[%s1822_s25] sm:$0x1] %vm1146_vm9, %v1145_v47 }
 0xb4a PF: > { %s1354_s12 = sshll.u32 %s1626_s17, 4  ;;  %s2023_s18 = sld [smem:[#allocation22_spill]] }
 0xb4b   : > { %s1161_s26 = sshll.u32 %s1822_s25, 4  ;;  %s2025_s10 = sand.u32 1, %s1614_s14   ;;  %s1162_s26 = int_to_ptr.vmem [resolvable:$true] %s1161_s26 }
 0xb4c   : > { %s1149_s19 = scalar_lea.sflag [#allocation6], %s2025_s10  ;;  %s1546_s0 = scalar_lea.vmem %s1162_s26, 16 }
 0xb4d   : > { %p1547_p2 = scmp.ne.s32.totalorder %s1162_s26, %s1546_s0  ;;  %s1646_s1 = smov [#allocation5]  }
 0xb4e   : > { %s1550_s3 = sshll.u32 %s1646_s1, 4  ;;  %s1551_s3 = int_to_ptr.vmem [resolvable:$false] %s1550_s3 }
 0xb4f   : > { %p1548_p4 = pnand %p1547_p2, %p1751_p3  ;;  %s1552_s4 = scalar_lea.vmem %s1551_s3, 32 }
 0xb50   : > { %s2024_s29 = smov %s2023_s18  ;;  %s1159_s13 = scalar_lea.hbm %s2023_s18, %s1354_s12 }
 0xb51   : > { %p1549_p5 = pneg %p1548_p4  ;;  %p1553_p6 = scmp.lt.s32.totalorder %s1162_s26, %s1551_s3 }
 0xb52   : > { %p1554_p7 = scmp.lt.s32.totalorder %s1552_s4, %s1546_s0 }
 0xb54   : > { %p1555_p8 = por %p1554_p7, %p1553_p6 }
 0xb56   : > { %p1556_p10 = pnand %p1555_p8, %p1549_p5 }
 0xb58   : > { %1559 = shalt.err (!%p1556_p10)
}
 0xb59   : > { %s1560_s17 = scalar_lea.hbm %s1159_s13, 16  ;;  %s1564_s30 = scalar_lea.hbm %s2024_s29, 32 }
 0xb5a   : > { %p1561_p11 = scmp.ne.s32.totalorder %s1159_s13, %s1560_s17  ;;  %p1565_p0 = scmp.lt.s32.totalorder %s1159_s13, %s2024_s29 }
 0xb5b   : > { %p1566_p1 = scmp.lt.s32.totalorder %s1564_s30, %s1560_s17 }
 0xb5c   : > { %p1562_p12 = pnand %p1561_p11, %p1751_p3 }
 0xb5d   : > { %p1567_p2 = por %p1566_p1, %p1565_p0 }
 0xb5e   : > { %p1563_p13 = pneg %p1562_p12 }
 0xb60   : > { %p1568_p4 = pnand %p1567_p2, %p1563_p13 }
 0xb62   : > { %1571 = shalt.err (!%p1568_p4)
}
 0xb63   : > { %1443 = dma.vmem_to_hbm [thread:$0]  (%p1751_p3), %s1162_s26, 16, %s1159_s13, %s1149_s19  }
 0xb64 PF: > { %s2026_s27 = sld [smem:[#allocation12_spill]] }
 0xb65   : > { %s2027_s23 = sld [smem:[#allocation8_spill]] }
 0xb6a   : > { %p1449_p5 = scmp.ge.s32.totalorder %s2026_s27, 2 }
 0xb6b   : > { %s1173_s22 = sand.u32 1, %s2027_s23  }
 0xb6c   : > { %p1446_p6 = pnand %p1449_p5, %p1761_p9  ;;  %s1174_s12 = scalar_lea.sflag [#allocation6], %s1173_s22 }
 0xb6e   : > { %p1447_p7 = pneg %p1446_p6 }
 0xb70   : > { %1605 = dma.done.wait (%p1447_p7), %s1174_s12, 16  }
 0xb71   : > { %1607 = vsyncadd (%p1447_p7), %s1174_s12, 4294967280  ;;  %s23_s20 = sadd.s32 1, %s2026_s27   ;;  %s2029_s24 = sld [smem:[#allocation9_spill]] }
 0xb72   : > { %p20_p8 = scmp.ge.s32.totalorder %s23_s20, 6   ;;  %s2030_s15 = sld [smem:[#allocation17_spill]] }
 0xb73   : > { %s2031_s16 = sld [smem:[#allocation10_spill]]  ;;  %s2035_s13 = smov %s1614_s14 }
 0xb74   : > { %s2032_s17 = sld [smem:[#allocation11_spill]]  ;;  %22 = sbr.rel (!%p20_p8) target bundleno = 11 (0xb), region = 127 }
 0xb75   : > { %s2033_s18 = sld [smem:[#allocation13_spill]] }
 0xb76   : > { %s2034_s19 = sld [smem:[#allocation15_spill]] }
 0xb77   : > { %s2036_s14 = smov %s2029_s24 }
 0xb79   :  { %1178 = vsyncpa [#allocation6], 1 }
 0xb7a   :  { %1180 = vsyncpa [#allocation6 + $0x1], 1 }

</bundles_post_ra>
